<compile_context>
chip_gen: v5e
topology: v5e:2x2
jax: 0.10.0
libtpu: 0.0.40
codegen_flags: <defaults>
</compile_context>

<pallas_src>
import functools

import jax
import jax.numpy as jnp
from jax.experimental import pallas as pl
from jax.experimental.pallas import tpu as pltpu


def _round_up(n, m):
    return ((n + m - 1) // m) * m


def ffm_kernel(xT_ref, wpairT_ref, wlin_ref, bias_ref, out_ref):
    x = xT_ref[...]                                              # (F, TB) f32, batch on lanes
    # Quadratic interaction: t[j, b] = sum_i W_pair[i, j] * x[b, i]
    t = jnp.dot(wpairT_ref[...], x,
                preferred_element_type=jnp.float32)              # (F, TB) via MXU
    # Fold linear term: sum_j x[b, j] * (t[j, b] + w_lin[j])  (VPU + sublane reduce)
    s = jnp.sum(x * (t + wlin_ref[...]), axis=0, keepdims=True)  # (1, TB)
    out_ref[...] = jax.nn.sigmoid(s + bias_ref[0, 0])            # lane-dense store


@functools.partial(jax.jit, static_argnames=("tile_b",))
def ffm_forward(x, w_pair, w_lin, bias, *, tile_b=1024):
    batch, feats = x.shape
    # Tile batch on the lane axis; round tiny batches up to one 128-lane tile.
    tb = min(tile_b, _round_up(batch, 128))
    b_pad = _round_up(batch, tb)

    xT = jnp.transpose(x)                                        # (F, B)
    if b_pad != batch:
        xT = jnp.pad(xT, ((0, 0), (0, b_pad - batch)))           # zero-pad tail lanes
    w_pair_t = jnp.transpose(w_pair)                             # (F, F) = W_pair^T

    grid = (b_pad // tb,)
    out = pl.pallas_call(
        ffm_kernel,
        out_shape=jax.ShapeDtypeStruct((1, b_pad), jnp.float32),
        grid_spec=pltpu.PrefetchScalarGridSpec(
            num_scalar_prefetch=0,
            grid=grid,
            in_specs=[
                # streamed: batch tiles of xT, lane-dense
                pl.BlockSpec((feats, tb), lambda i: (0, i)),
                # resident across the whole grid
                pl.BlockSpec((feats, feats), lambda i: (0, 0)),
                pl.BlockSpec((feats, 1), lambda i: (0, 0)),
                # scalar bias lives in SMEM (no VMEM tile / DMA burned on it)
                pl.BlockSpec(memory_space=pltpu.MemorySpace.SMEM),
            ],
            out_specs=pl.BlockSpec((1, tb), lambda i: (0, i)),
        ),
        compiler_params=pltpu.CompilerParams(
            dimension_semantics=("parallel",),      # shard batch across v7x's 2 TCs
            vmem_limit_bytes=32 * 1024 * 1024,      # safe on v5e/v6e/v7x, tiles are tiny
        ),
    )(xT, w_pair_t, w_lin, bias)

    return out[:, :batch].reshape(batch, 1)


def build_pair_weights(v, feature2field):
    """W_pair[i,j] = <v[i, field[j]], v[j, field[i]]> for i<j and field[i]!=field[j]."""
    f2f = jnp.asarray(feature2field, dtype=jnp.int32)            # (F,)
    feats = v.shape[0]
    vi_fj = v[:, f2f, :]                                         # (F, F, H): v[i, field[j]]
    vj_fi = jnp.transpose(vi_fj, (1, 0, 2))                      # (F, F, H): v[j, field[i]]
    w_full = jnp.sum(vi_fj * vj_fi, axis=-1)                     # (F, F)
    ii = jnp.arange(feats)
    upper = (ii[:, None] < ii[None, :])
    diff_field = (f2f[:, None] != f2f[None, :])
    return jnp.where(upper & diff_field, w_full, 0.0).astype(jnp.float32)


def ffm_reference(x, v, feature2field, w_lin, bias):
    """Pure-JAX reference mirroring the PyTorch double loop (vectorized)."""
    w_pair = build_pair_weights(v, feature2field)
    first = x @ w_lin + bias                                     # (B, 1)
    second = jnp.sum((x @ w_pair) * x, axis=-1, keepdims=True)   # (B, 1)
    return jax.nn.sigmoid(first + second)


if __name__ == "__main__":
    # Small, deterministic problem setup (exercises the padded-tail path: B=8 < 128).
    batch = 8
    feats_num = 16
    hidden_dim = 8
    fields_num = 4
    feature2field = [i % fields_num for i in range(feats_num)]

    key = jax.random.PRNGKey(0)
    kx, kv, kw, kb = jax.random.split(key, 4)

    x = jax.random.normal(kx, (batch, feats_num), dtype=jnp.float32)

    # Parameters (deterministic synthetic init, shapes match the PyTorch module):
    #   v: (feats_num, fields_num, hidden_dim)   ~ xavier-uniform-ish
    #   linear: weight (feats_num, 1) [transposed Linear weight], bias (1, 1)
    limit = (6.0 / (fields_num + hidden_dim)) ** 0.5
    v = jax.random.uniform(kv, (feats_num, fields_num, hidden_dim),
                           minval=-limit, maxval=limit, dtype=jnp.float32)
    w_lin = jax.random.normal(kw, (feats_num, 1), dtype=jnp.float32) * 0.1
    bias = jax.random.normal(kb, (1, 1), dtype=jnp.float32) * 0.1

    # Parameter prep (glue): masked pair-weight matrix.
    w_pair = build_pair_weights(v, feature2field)

    out = ffm_forward(x, w_pair, w_lin, bias)
    out = jax.block_until_ready(out)

    ref = ffm_reference(x, v, feature2field, w_lin, bias)
    assert out.shape == (batch, 1)
    assert jnp.allclose(out, ref, atol=1e-5, rtol=1e-4), (out, ref)

    print("KERNEL_OK")
</pallas_src>

<mosaic_0001>
module attributes {stable_mosaic.version = 11 : i64} {
  func.func @ffm_kernel(%arg0: i32, %arg1: memref<16x128xf32, #tpu.memory_space<vmem>>, %arg2: memref<16x16xf32, #tpu.memory_space<vmem>>, %arg3: memref<16x1xf32, #tpu.memory_space<vmem>>, %arg4: memref<1x1xf32, #tpu.memory_space<smem>>, %arg5: memref<1x128xf32, #tpu.memory_space<vmem>>) attributes {dimension_semantics = [#tpu.dimension_semantics<parallel>], iteration_bounds = array<i64: 1>, scalar_prefetch = 0 : i64, scratch_operands = 0 : i64, tpu.core_type = #tpu.core_type<tc>, window_params = [{transform_indices = @transform_0, window_bounds = array<i64: 16, 128>}, {pipeline_mode = #tpu.pipeline_mode<synchronous>, transform_indices = @transform_1, window_bounds = array<i64: 16, 16>}, {pipeline_mode = #tpu.pipeline_mode<synchronous>, transform_indices = @transform_2, window_bounds = array<i64: 16, 1>}, {transform_indices = @transform_3, window_bounds = array<i64: 1, 1>}, {transform_indices = @transform_4, window_bounds = array<i64: 1, 128>}]} {
    %c0 = arith.constant 0 : index
    %c0_0 = arith.constant 0 : index
    %0 = vector.load %arg1[%c0, %c0_0] : memref<16x128xf32, #tpu.memory_space<vmem>>, vector<16x128xf32>
    %c0_1 = arith.constant 0 : index
    %c0_2 = arith.constant 0 : index
    %1 = vector.load %arg2[%c0_1, %c0_2] : memref<16x16xf32, #tpu.memory_space<vmem>>, vector<16x16xf32>
    %cst = arith.constant dense<0.000000e+00> : vector<16x128xf32>
    %2 = tpu.matmul %1, %0, %cst {dimension_numbers = #tpu.dot_dimension_numbers<[1], [0], [0], [1], [0, 0, 1, 1], [], []>} : vector<16x16xf32>, vector<16x128xf32>, vector<16x128xf32> -> vector<16x128xf32>
    %c0_3 = arith.constant 0 : index
    %c0_4 = arith.constant 0 : index
    %3 = vector.load %arg3[%c0_3, %c0_4] : memref<16x1xf32, #tpu.memory_space<vmem>>, vector<16x1xf32>
    %4 = vector.broadcast %3 : vector<16x1xf32> to vector<16x128xf32>
    %5 = arith.addf %2, %4 : vector<16x128xf32>
    %6 = arith.mulf %0, %5 : vector<16x128xf32>
    %cst_5 = arith.constant dense<0.000000e+00> : vector<128xf32>
    %7 = vector.multi_reduction <add>, %6, %cst_5 [0] : vector<16x128xf32> to vector<128xf32>
    %8 = vector.shape_cast %7 : vector<128xf32> to vector<1x128xf32>
    %c0_6 = arith.constant 0 : index
    %c0_7 = arith.constant 0 : index
    %9 = memref.load %arg4[%c0_6, %c0_7] : memref<1x1xf32, #tpu.memory_space<smem>>
    %10 = vector.broadcast %9 : f32 to vector<1x128xf32>
    %11 = arith.addf %8, %10 : vector<1x128xf32>
    %12 = arith.negf %11 : vector<1x128xf32>
    %13 = math.exp %12 : vector<1x128xf32>
    %cst_8 = arith.constant 1.000000e+00 : f32
    %14 = vector.broadcast %cst_8 : f32 to vector<1x128xf32>
    %15 = arith.addf %14, %13 : vector<1x128xf32>
    %16 = arith.divf %14, %15 : vector<1x128xf32>
    %c0_9 = arith.constant 0 : index
    %c0_10 = arith.constant 0 : index
    %17 = vector.load %arg5[%c0_9, %c0_10] : memref<1x128xf32, #tpu.memory_space<vmem>>, vector<1x128xf32>
    tpu.vector_store %arg5[%c0_9, %c0_10], %16 {strides = array<i32>} : memref<1x128xf32, #tpu.memory_space<vmem>>, vector<1x128xf32>,
    return
  }
  func.func @transform_0(%arg0: i32) -> (i32, i32) {
    %c0_i32 = arith.constant 0 : i32
    %c0_i32_0 = arith.constant 0 : i32
    return %c0_i32, %arg0 : i32, i32
  }
  func.func @transform_1(%arg0: i32) -> (i32, i32) {
    %c0_i32 = arith.constant 0 : i32
    %c0_i32_0 = arith.constant 0 : i32
    %c0_i32_1 = arith.constant 0 : i32
    return %c0_i32, %c0_i32_0 : i32, i32
  }
  func.func @transform_2(%arg0: i32) -> (i32, i32) {
    %c0_i32 = arith.constant 0 : i32
    %c0_i32_0 = arith.constant 0 : i32
    %c0_i32_1 = arith.constant 0 : i32
    return %c0_i32, %c0_i32_0 : i32, i32
  }
  func.func @transform_3(%arg0: i32) -> (i32, i32) {
    %c0_i32 = arith.constant 0 : i32
    %c0_i32_0 = arith.constant 0 : i32
    %c0_i32_1 = arith.constant 0 : i32
    return %c0_i32, %c0_i32_0 : i32, i32
  }
  func.func @transform_4(%arg0: i32) -> (i32, i32) {
    %c0_i32 = arith.constant 0 : i32
    %c0_i32_0 = arith.constant 0 : i32
    return %c0_i32, %arg0 : i32, i32
  }
}

</mosaic_0001>

<bundles_post_ra>
// kernel: ffm_forward.1
= control target key start
LH: loop header
LB: loop body
LE: loop exit
PB: predicated region body
PF: predicated region fallthrough
CT: control target
= control target key end

     0   :  { %v111_v0 = vmov 0   ;;  %vm34_vm0 = vcmask 130048   ;;  %s161_s2 = inlined_call_operand.vmem [shape: f32[16,1], index: 2, kind: input, shape index: {}]   ;;  %s162_s0 = inlined_call_operand.vmem [shape: f32[16,128], index: 0, kind: input, shape index: {}]   ;;  %s163_s1 = inlined_call_operand.vmem [shape: f32[16,16], index: 1, kind: input, shape index: {}]   ;;  %s164_s3 = inlined_call_operand.<no memory space> [shape: f32[1,1], index: 3, kind: input, shape index: {}]   ;;  %s165_s4 = inlined_call_operand.vmem [shape: f32[1,128], index: 4, kind: output, shape index: {}]  }
   0x1   :  { %106 = vset.pattern.permute.xlu0 %v111_v0  ;;  %v22_v1 = vld [vmem:[%s161_s2] sm:$0xff]  ;;  %v19_v2 = vld [vmem:[%s162_s0 + $0x8] sm:$0xff]  ;;  %v74_v21 = vstv %s164_s3 }
   0x2   :  { %v18_v3 = vld [vmem:[%s162_s0] sm:$0xff]  ;;  %26 = vperm.xlu0 %106, %v22_v1   ;;  %55 = vmatpush.msra.mxu0 %v19_v2  ;;  %v21_v5 = vld [vmem:[%s163_s1 + $0x8] sm:$0xff] }
   0x3   :  { %v20_v4 = vld [vmem:[%s163_s1] sm:$0xff]  ;;  %103 = vmatpush.msra.mxu1 %v19_v2  ;;  %v23_v6 = vld [vmem:[%s161_s2 + $0x8] sm:$0xff] }
   0x4   :  { %56 = vmatpush.msra.mxu0 %v18_v3 }
   0x5   :  { %104 = vmatpush.msra.mxu1 %v18_v3  ;;  %100 = vmatmul.msk.f32.vlgmr.msra.gmra.mxu0 %vm34_vm0, %v20_v4 }
   0x6   :  { %101 = vmatmul.msk.f32.vlgmr.msra.gmra.mxu1 %vm34_vm0, %v21_v5 }
   0xa   :  { %31 = vperm.xlu0 %106, %v23_v6  }
  0x74   :  { %v27_v7 = vpop.permute.xlu0 %26 }
  0x7c   :  { %v32_v9 = vpop.permute.xlu0 %31 }
  0x82   :  { %v58_v8 = vpop.f32.mrf.mxu0 }
  0x83   :  { %v59_v10 = vadd.f32 %v58_v8, %v27_v7  ;;  %v61_v11 = vpop.f32.mrf.mxu1 }
  0x84   :  { %v62_v12 = vadd.f32 %v61_v11, %v32_v9 }
  0x85   :  { %v64_v13 = vmul.f32 %v59_v10, %v18_v3 }
  0x86   :  { %v65_v14 = vmul.f32 %v62_v12, %v19_v2 }
  0x88   :  { %v66_v15 = vadd.f32 %v65_v14, %v64_v13 }
  0x8a   :  { %v67_v16 = vrot.slane %v66_v15, 4 }
  0x8c   :  { %v68_v17 = vadd.f32 %v67_v16, %v66_v15 }
  0x8e   :  { %v69_v18 = vrot.slane %v68_v17, 2 }
  0x90   :  { %v70_v19 = vadd.f32 %v69_v18, %v68_v17 }
  0x92   :  { %v71_v20 = vrot.slane %v70_v19, 1 }
  0x94   :  { %v72_v22 = vadd.f32 %v71_v20, %v70_v19 }
  0x96   :  { %v75_v23 = vadd.f32 %v74_v21, %v72_v22 }
  0x98   :  { %v102_v24 = vmul.f32 -1.442695, %v75_v23 }
  0x9a   :  { %107 = vpow2.f32 %v102_v24 }
  0xa0   :  { %v108_v25 = vpop.eup %107 }
  0xa1   :  { %v79_v26 = vadd.f32 1.0, %v108_v25 }
  0xa3   :  { %109 = vrcp.f32 %v79_v26  ;;  %v91_v30 = vand.u32 2147483648, %v79_v26  ;;  %v89_v32 = vand.u32 2147483647, %v79_v26  ;;  %vm85_vm2 = vweird.f32 %v79_v26 }
  0xa5   :  { %v92_v34 = vor.u32 1.1754944e-38, %v91_v30  ;;  %vm90_vm4 = vcmp.eq.f32.partialorder %v89_v32, 8.507059e+37 }
  0xa9   :  { %v110_v27 = vpop.eup %109 }
  0xaa   :  { %v81_v28 = vmul.f32 %v110_v27, %v79_v26  ;;  %vm86_vm1 = vweird.f32 %v110_v27 }
  0xab   :  { %vm87_vm3 = vmor %vm85_vm2, %vm86_vm1 }
  0xac   :  { %v82_v29 = vsub.f32 1.0, %v81_v28 }
  0xae   :  { %v83_v31 = vmul.f32 %v110_v27, %v82_v29 }
  0xb0   :  { %v84_v33 = vadd.f32 %v110_v27, %v83_v31 }
  0xb2   :  { %v88_v35 = vsel %vm87_vm3, %v110_v27, %v84_v33 }
  0xb3   :  { %v93_v36 = vsel %vm90_vm4, %v92_v34, %v88_v35 }
  0xb4   :  { %95 = vst [vmem:[%s165_s4] sm:$0x1] %v93_v36 }

</bundles_post_ra>
